<compile_context>
chip_gen: v5e
topology: v5e:2x2
jax: 0.10.0
libtpu: 0.0.40
codegen_flags: <defaults>
</compile_context>

<pallas_src>
import functools

import jax
import jax.numpy as jnp
from jax.experimental import pallas as pl
from jax.experimental.pallas import tpu as pltpu


def _attention_se_kernel(x_ref, wqkv_ref, wproj_ref, bproj_ref, wse1_ref, wse2_ref,
                         o_ref, *, num_heads):
    f32 = jnp.float32
    bf16 = jnp.bfloat16

    xb = x_ref[0]                                   # (N, C) f32, current batch element
    N, C = xb.shape
    H = num_heads
    hd = C // H

    # ---- fused QKV: one lane-dense (N, C) @ (C, 3C) MXU matmul (bf16 in, f32 acc) ----
    qkv = jnp.dot(xb.astype(bf16), wqkv_ref[...], preferred_element_type=f32)   # (N, 3C)

    # Split heads from the fused result.  1/sqrt(hd) is already folded into the Q
    # columns of wqkv (done in the wrapper), so no extra score scaling is needed.
    def split_heads(t):                              # (N, C) -> (H, N, hd)
        return t.reshape(N, H, hd).transpose(1, 0, 2)

    q = split_heads(qkv[:, 0 * C:1 * C]).astype(bf16)
    k = split_heads(qkv[:, 1 * C:2 * C]).astype(bf16)
    v = split_heads(qkv[:, 2 * C:3 * C]).astype(bf16)

    # ---- scores + unnormalized softmax (normalization deferred past the PV matmul) ----
    s = jnp.einsum("hqd,hkd->hqk", q, k, preferred_element_type=f32)            # (H, N, N)
    s = s - jnp.max(s, axis=-1, keepdims=True)
    e = jnp.exp(s)                                                               # f32 (v5e-safe)
    rowsum = jnp.sum(e, axis=-1, keepdims=True)                                  # (H, N, 1)

    ctx = jnp.einsum("hqk,hkd->hqd", e.astype(bf16), v,
                     preferred_element_type=f32)                                 # (H, N, hd)
    # O(N*hd) normalization instead of O(N*N); reciprocal goes to the EUP slot.
    ctx = ctx * pl.reciprocal(rowsum, approx=True)

    # ---- merge heads + output projection: single (N, C) @ (C, C) matmul ----
    ctx_flat = ctx.transpose(1, 0, 2).reshape(N, C)                              # (N, C)
    proj = jnp.dot(ctx_flat.astype(bf16), wproj_ref[...],
                   preferred_element_type=f32) + bproj_ref[...]                  # (N, C) f32

    # ---- SE gate: channel gate from the mean over tokens ----
    ch_mean = jnp.mean(proj, axis=0, keepdims=True)                              # (1, C)
    g = jnp.maximum(jnp.dot(ch_mean, wse1_ref[...], preferred_element_type=f32), 0.0)
    g = jax.nn.sigmoid(jnp.dot(g, wse2_ref[...], preferred_element_type=f32))    # (1, C)

    o_ref[0] = proj * g                                                          # (N, C)


def _full_spec(a):
    nd = a.ndim
    # Invariant weight slab: same block for every grid step.
    # (On v7x, pipeline_mode=pl.Buffered(1) could halve its VMEM footprint.)
    return pl.BlockSpec(a.shape, lambda b, _nd=nd: (0,) * _nd)


def _vmem_limit_bytes():
    # Generation-aware VMEM budget: ~3/4 of physical, capped at 100 MiB.
    cap = None
    try:
        cap = getattr(pltpu.get_tpu_info(), "vmem_capacity_bytes", None)
    except Exception:
        cap = None
    if not cap:
        cap = 64 * 1024 * 1024
    return min(int(cap) * 3 // 4, 100 * 1024 * 1024)


def attention_se_pallas(x, params, *, num_heads):
    B, N, C = x.shape
    hd = C // num_heads
    scale = hd ** (-0.5)

    # Fold the attention scale into the Q columns of the fused qkv weight (free, XLA-side),
    # then cast MXU operands to bf16 (halves weight DMA too).  SE weights / bias stay f32.
    wqkv = params["wqkv"]                                                       # (C, 3C)
    wqkv = jnp.concatenate([wqkv[:, :C] * scale, wqkv[:, C:]], axis=1).astype(jnp.bfloat16)
    wproj = params["wproj"].astype(jnp.bfloat16)                                # (C, C)
    bproj = params["bproj"].astype(jnp.float32).reshape(1, C)                   # (1, C)
    wse1 = params["wse1"].astype(jnp.float32)                                   # (C, C//r)
    wse2 = params["wse2"].astype(jnp.float32)                                   # (C//r, C)

    weights = (wqkv, wproj, bproj, wse1, wse2)
    kernel = functools.partial(_attention_se_kernel, num_heads=num_heads)

    return pl.pallas_call(
        kernel,
        out_shape=jax.ShapeDtypeStruct((B, N, C), jnp.float32),
        grid_spec=pltpu.PrefetchScalarGridSpec(
            num_scalar_prefetch=0,
            grid=(B,),
            in_specs=[pl.BlockSpec((1, N, C), lambda b: (b, 0, 0))]
                     + [_full_spec(w) for w in weights],
            out_specs=pl.BlockSpec((1, N, C), lambda b: (b, 0, 0)),
        ),
        compiler_params=pltpu.CompilerParams(
            dimension_semantics=("parallel",),
            vmem_limit_bytes=_vmem_limit_bytes(),
        ),
    )(x, *weights)


# ---------------- pure-JAX f32 reference (mirrors the PyTorch forward) ----------------
def attention_se_ref(x, p, *, num_heads):
    B, N, C = x.shape
    hd = C // num_heads
    scale = hd ** (-0.5)

    qkv = (x @ p["wqkv"]).reshape(B, N, 3, num_heads, hd).transpose(2, 0, 3, 1, 4)
    q, k, v = qkv[0], qkv[1], qkv[2]                                  # (B, H, N, hd)
    attn = jnp.einsum("bhqd,bhkd->bhqk", q, k) * scale
    attn = jax.nn.softmax(attn, axis=-1)
    o = jnp.einsum("bhqk,bhkd->bhqd", attn, v).transpose(0, 2, 1, 3).reshape(B, N, C)
    o = o @ p["wproj"] + p["bproj"]
    # SE layer: gate from mean over tokens
    gate = jax.nn.sigmoid(jnp.maximum(jnp.mean(o, axis=1) @ p["wse1"], 0.0) @ p["wse2"])
    return o * gate[:, None, :]


if __name__ == "__main__":
    B, N, C = 2, 8, 32
    num_heads = 4
    reduction = 16
    Cse = C // reduction

    key = jax.random.PRNGKey(0)
    ks = jax.random.split(key, 8)

    params = {
        "wqkv":  0.02 * jax.random.normal(ks[0], (C, 3 * C), jnp.float32),  # qkv_bias=False
        "wproj": 0.02 * jax.random.normal(ks[1], (C, C), jnp.float32),
        "bproj": 0.02 * jax.random.normal(ks[2], (1, C), jnp.float32),
        "wse1":  0.02 * jax.random.normal(ks[3], (C, Cse), jnp.float32),    # SE fc1 (no bias)
        "wse2":  0.02 * jax.random.normal(ks[4], (Cse, C), jnp.float32),    # SE fc2 (no bias)
    }

    x = jax.random.normal(ks[5], (B, N, C), jnp.float32)

    out = attention_se_pallas(x, params, num_heads=num_heads)
    out = jax.block_until_ready(out)

    ref = attention_se_ref(x, params, num_heads=num_heads)
    assert out.shape == (B, N, C)
    # bf16 MXU operands + approx reciprocal => modestly relaxed tolerance vs f32 reference.
    assert jnp.allclose(out, ref, atol=3e-3, rtol=2e-2), "mismatch vs reference"

    print("KERNEL_OK")
</pallas_src>

<mosaic_0001>
module attributes {stable_mosaic.version = 11 : i64} {
  func.func @_attention_se_kernel(%arg0: i32, %arg1: memref<1x8x32xf32, #tpu.memory_space<vmem>>, %arg2: memref<32x96xbf16, #tpu.memory_space<vmem>>, %arg3: memref<32x32xbf16, #tpu.memory_space<vmem>>, %arg4: memref<1x32xf32, #tpu.memory_space<vmem>>, %arg5: memref<32x2xf32, #tpu.memory_space<vmem>>, %arg6: memref<2x32xf32, #tpu.memory_space<vmem>>, %arg7: memref<1x8x32xf32, #tpu.memory_space<vmem>>) attributes {dimension_semantics = [#tpu.dimension_semantics<parallel>], iteration_bounds = array<i64: 2>, scalar_prefetch = 0 : i64, scratch_operands = 0 : i64, tpu.core_type = #tpu.core_type<tc>, window_params = [{transform_indices = @transform_0, window_bounds = array<i64: 1, 8, 32>}, {pipeline_mode = #tpu.pipeline_mode<synchronous>, transform_indices = @transform_1, window_bounds = array<i64: 32, 96>}, {pipeline_mode = #tpu.pipeline_mode<synchronous>, transform_indices = @transform_2, window_bounds = array<i64: 32, 32>}, {pipeline_mode = #tpu.pipeline_mode<synchronous>, transform_indices = @transform_3, window_bounds = array<i64: 1, 32>}, {pipeline_mode = #tpu.pipeline_mode<synchronous>, transform_indices = @transform_4, window_bounds = array<i64: 32, 2>}, {pipeline_mode = #tpu.pipeline_mode<synchronous>, transform_indices = @transform_5, window_bounds = array<i64: 2, 32>}, {transform_indices = @transform_6, window_bounds = array<i64: 1, 8, 32>}]} {
    %c0 = arith.constant 0 : index
    %c0_0 = arith.constant 0 : index
    %c0_1 = arith.constant 0 : index
    %0 = vector.load %arg1[%c0, %c0_0, %c0_1] : memref<1x8x32xf32, #tpu.memory_space<vmem>>, vector<1x8x32xf32>
    %1 = vector.shape_cast %0 : vector<1x8x32xf32> to vector<8x32xf32>
    %2 = arith.truncf %1 : vector<8x32xf32> to vector<8x32xbf16>
    %c0_2 = arith.constant 0 : index
    %c0_3 = arith.constant 0 : index
    %3 = vector.load %arg2[%c0_2, %c0_3] : memref<32x96xbf16, #tpu.memory_space<vmem>>, vector<32x96xbf16>
    %cst = arith.constant dense<0.000000e+00> : vector<8x96xf32>
    %4 = tpu.matmul %2, %3, %cst {dimension_numbers = #tpu.dot_dimension_numbers<[1], [0], [0], [1], [0, 0, 1, 1], [], []>} : vector<8x32xbf16>, vector<32x96xbf16>, vector<8x96xf32> -> vector<8x96xf32>
    %5 = vector.extract_strided_slice %4 {offsets = [0, 0], sizes = [8, 32], strides = [1, 1]} : vector<8x96xf32> to vector<8x32xf32>
    %6 = vector.shape_cast %5 : vector<8x32xf32> to vector<8x4x8xf32>
    %7 = tpu.transpose %6, [1, 0, 2] : vector<8x4x8xf32> -> vector<4x8x8xf32>
    %8 = arith.truncf %7 : vector<4x8x8xf32> to vector<4x8x8xbf16>
    %9 = vector.extract_strided_slice %4 {offsets = [0, 32], sizes = [8, 32], strides = [1, 1]} : vector<8x96xf32> to vector<8x32xf32>
    %10 = vector.shape_cast %9 : vector<8x32xf32> to vector<8x4x8xf32>
    %11 = tpu.transpose %10, [1, 0, 2] : vector<8x4x8xf32> -> vector<4x8x8xf32>
    %12 = arith.truncf %11 : vector<4x8x8xf32> to vector<4x8x8xbf16>
    %13 = vector.extract_strided_slice %4 {offsets = [0, 64], sizes = [8, 32], strides = [1, 1]} : vector<8x96xf32> to vector<8x32xf32>
    %14 = vector.shape_cast %13 : vector<8x32xf32> to vector<8x4x8xf32>
    %15 = tpu.transpose %14, [1, 0, 2] : vector<8x4x8xf32> -> vector<4x8x8xf32>
    %16 = arith.truncf %15 : vector<4x8x8xf32> to vector<4x8x8xbf16>
    "tpu.trace_start"() <{level = 10 : i32, message = "hqd,hkd->hqk"}> : () -> ()
    %cst_4 = arith.constant dense<0.000000e+00> : vector<4x8x8xf32>
    %17 = tpu.matmul %8, %12, %cst_4 {dimension_numbers = #tpu.dot_dimension_numbers<[2], [2], [1], [1], [0, 0, 0, 1, 1, 1], [0], [0]>} : vector<4x8x8xbf16>, vector<4x8x8xbf16>, vector<4x8x8xf32> -> vector<4x8x8xf32>
    "tpu.trace_stop"() : () -> ()
    %cst_5 = arith.constant dense<0xFF800000> : vector<4x8xf32>
    %18 = vector.multi_reduction <maximumf>, %17, %cst_5 [2] : vector<4x8x8xf32> to vector<4x8xf32>
    %19 = vector.shape_cast %18 : vector<4x8xf32> to vector<4x8x1xf32>
    %20 = vector.broadcast %19 : vector<4x8x1xf32> to vector<4x8x8xf32>
    %21 = arith.subf %17, %20 : vector<4x8x8xf32>
    %22 = math.exp %21 : vector<4x8x8xf32>
    %cst_6 = arith.constant dense<0.000000e+00> : vector<4x8xf32>
    %23 = vector.multi_reduction <add>, %22, %cst_6 [2] : vector<4x8x8xf32> to vector<4x8xf32>
    %24 = vector.shape_cast %23 : vector<4x8xf32> to vector<4x8x1xf32>
    %25 = arith.truncf %22 : vector<4x8x8xf32> to vector<4x8x8xbf16>
    "tpu.trace_start"() <{level = 10 : i32, message = "hqk,hkd->hqd"}> : () -> ()
    %cst_7 = arith.constant dense<0.000000e+00> : vector<4x8x8xf32>
    %26 = tpu.matmul %25, %16, %cst_7 {dimension_numbers = #tpu.dot_dimension_numbers<[2], [1], [1], [2], [0, 0, 0, 1, 1, 2], [0], [0]>} : vector<4x8x8xbf16>, vector<4x8x8xbf16>, vector<4x8x8xf32> -> vector<4x8x8xf32>
    "tpu.trace_stop"() : () -> ()
    %27 = tpu.reciprocal %24 {approx = true} : vector<4x8x1xf32> -> vector<4x8x1xf32>
    %28 = vector.broadcast %27 : vector<4x8x1xf32> to vector<4x8x8xf32>
    %29 = arith.mulf %26, %28 : vector<4x8x8xf32>
    %30 = tpu.transpose %29, [1, 0, 2] : vector<4x8x8xf32> -> vector<8x4x8xf32>
    %31 = vector.shape_cast %30 : vector<8x4x8xf32> to vector<8x32xf32>
    %32 = arith.truncf %31 : vector<8x32xf32> to vector<8x32xbf16>
    %c0_8 = arith.constant 0 : index
    %c0_9 = arith.constant 0 : index
    %33 = vector.load %arg3[%c0_8, %c0_9] : memref<32x32xbf16, #tpu.memory_space<vmem>>, vector<32x32xbf16>
    %cst_10 = arith.constant dense<0.000000e+00> : vector<8x32xf32>
    %34 = tpu.matmul %32, %33, %cst_10 {dimension_numbers = #tpu.dot_dimension_numbers<[1], [0], [0], [1], [0, 0, 1, 1], [], []>} : vector<8x32xbf16>, vector<32x32xbf16>, vector<8x32xf32> -> vector<8x32xf32>
    %c0_11 = arith.constant 0 : index
    %c0_12 = arith.constant 0 : index
    %35 = vector.load %arg4[%c0_11, %c0_12] : memref<1x32xf32, #tpu.memory_space<vmem>>, vector<1x32xf32>
    %36 = vector.broadcast %35 : vector<1x32xf32> to vector<8x32xf32>
    %37 = arith.addf %34, %36 : vector<8x32xf32>
    %cst_13 = arith.constant dense<0.000000e+00> : vector<32xf32>
    %38 = vector.multi_reduction <add>, %37, %cst_13 [0] : vector<8x32xf32> to vector<32xf32>
    %39 = vector.shape_cast %38 : vector<32xf32> to vector<1x32xf32>
    %cst_14 = arith.constant 8.000000e+00 : f32
    %40 = vector.broadcast %cst_14 : f32 to vector<1x32xf32>
    %41 = arith.divf %39, %40 : vector<1x32xf32>
    %c0_15 = arith.constant 0 : index
    %c0_16 = arith.constant 0 : index
    %42 = vector.load %arg5[%c0_15, %c0_16] : memref<32x2xf32, #tpu.memory_space<vmem>>, vector<32x2xf32>
    %cst_17 = arith.constant dense<0.000000e+00> : vector<1x2xf32>
    %43 = tpu.matmul %41, %42, %cst_17 {dimension_numbers = #tpu.dot_dimension_numbers<[1], [0], [0], [1], [0, 0, 1, 1], [], []>} : vector<1x32xf32>, vector<32x2xf32>, vector<1x2xf32> -> vector<1x2xf32>
    %cst_18 = arith.constant 0.000000e+00 : f32
    %44 = vector.broadcast %cst_18 : f32 to vector<1x2xf32>
    %45 = arith.maximumf %43, %44 : vector<1x2xf32>
    %c0_19 = arith.constant 0 : index
    %c0_20 = arith.constant 0 : index
    %46 = vector.load %arg6[%c0_19, %c0_20] : memref<2x32xf32, #tpu.memory_space<vmem>>, vector<2x32xf32>
    %cst_21 = arith.constant dense<0.000000e+00> : vector<1x32xf32>
    %47 = tpu.matmul %45, %46, %cst_21 {dimension_numbers = #tpu.dot_dimension_numbers<[1], [0], [0], [1], [0, 0, 1, 1], [], []>} : vector<1x2xf32>, vector<2x32xf32>, vector<1x32xf32> -> vector<1x32xf32>
    %48 = arith.negf %47 : vector<1x32xf32>
    %49 = math.exp %48 : vector<1x32xf32>
    %cst_22 = arith.constant 1.000000e+00 : f32
    %50 = vector.broadcast %cst_22 : f32 to vector<1x32xf32>
    %51 = arith.addf %50, %49 : vector<1x32xf32>
    %52 = arith.divf %50, %51 : vector<1x32xf32>
    %53 = vector.broadcast %52 : vector<1x32xf32> to vector<8x32xf32>
    %54 = arith.mulf %37, %53 : vector<8x32xf32>
    %c0_23 = arith.constant 0 : index
    %c0_24 = arith.constant 0 : index
    %c0_25 = arith.constant 0 : index
    %55 = vector.load %arg7[%c0_23, %c0_24, %c0_25] : memref<1x8x32xf32, #tpu.memory_space<vmem>>, vector<1x8x32xf32>
    %56 = vector.shape_cast %55 : vector<1x8x32xf32> to vector<8x32xf32>
    %57 = vector.shape_cast %54 : vector<8x32xf32> to vector<1x8x32xf32>
    tpu.vector_store %arg7[%c0_23, %c0_24, %c0_25], %57 {strides = array<i32>} : memref<1x8x32xf32, #tpu.memory_space<vmem>>, vector<1x8x32xf32>,
    return
  }
  func.func @transform_0(%arg0: i32) -> (i32, i32, i32) {
    %c0_i32 = arith.constant 0 : i32
    %c0_i32_0 = arith.constant 0 : i32
    %c0_i32_1 = arith.constant 0 : i32
    return %arg0, %c0_i32, %c0_i32_0 : i32, i32, i32
  }
  func.func @transform_1(%arg0: i32) -> (i32, i32) {
    %c0_i32 = arith.constant 0 : i32
    %c0_i32_0 = arith.constant 0 : i32
    %c0_i32_1 = arith.constant 0 : i32
    return %c0_i32, %c0_i32_0 : i32, i32
  }
  func.func @transform_2(%arg0: i32) -> (i32, i32) {
    %c0_i32 = arith.constant 0 : i32
    %c0_i32_0 = arith.constant 0 : i32
    %c0_i32_1 = arith.constant 0 : i32
    return %c0_i32, %c0_i32_0 : i32, i32
  }
  func.func @transform_3(%arg0: i32) -> (i32, i32) {
    %c0_i32 = arith.constant 0 : i32
    %c0_i32_0 = arith.constant 0 : i32
    %c0_i32_1 = arith.constant 0 : i32
    return %c0_i32, %c0_i32_0 : i32, i32
  }
  func.func @transform_4(%arg0: i32) -> (i32, i32) {
    %c0_i32 = arith.constant 0 : i32
    %c0_i32_0 = arith.constant 0 : i32
    %c0_i32_1 = arith.constant 0 : i32
    return %c0_i32, %c0_i32_0 : i32, i32
  }
  func.func @transform_5(%arg0: i32) -> (i32, i32) {
    %c0_i32 = arith.constant 0 : i32
    %c0_i32_0 = arith.constant 0 : i32
    %c0_i32_1 = arith.constant 0 : i32
    return %c0_i32, %c0_i32_0 : i32, i32
  }
  func.func @transform_6(%arg0: i32) -> (i32, i32, i32) {
    %c0_i32 = arith.constant 0 : i32
    %c0_i32_0 = arith.constant 0 : i32
    %c0_i32_1 = arith.constant 0 : i32
    return %arg0, %c0_i32, %c0_i32_0 : i32, i32, i32
  }
}

</mosaic_0001>

<bundles_post_ra>
// kernel: tpu_custom_call.1
= control target key start
LH: loop header
LB: loop body
LE: loop exit
PB: predicated region body
PF: predicated region fallthrough
CT: control target
= control target key end

     0   :  { %11 = vsyncpa [#allocation3], 0  ;;  %s1852_s0 = inlined_call_operand.vmem [shape: f32[2,8,32], index: 0, kind: input, shape index: {}]   ;;  %s1853_s1 = inlined_call_operand.vmem [shape: bf16[32,96], index: 1, kind: input, shape index: {}]   ;;  %s1854_s2 = inlined_call_operand.hbm [shape: bf16[32,32], index: 2, kind: input, shape index: {}]   ;;  %s1855_s3 = inlined_call_operand.vmem [shape: f32[1,32], index: 3, kind: input, shape index: {}]   ;;  %s1856_s4 = inlined_call_operand.vmem [shape: f32[32,2], index: 4, kind: input, shape index: {}]   ;;  %s1857_s5 = inlined_call_operand.vmem [shape: f32[2,32], index: 5, kind: input, shape index: {}]   ;;  %s1858_s6 = inlined_call_operand.hbm [shape: f32[2,8,32], index: 6, kind: output, shape index: {}]  }
   0x1   :  { %12 = vsyncpa [#allocation4], 0 }
   0x2   :  { %14 = vsyncpa [#allocation4 + $0x1], 0  ;;  %s1523_s21 = smov 0   ;;  %s1525_s22 = smov 0  }
   0x3   :  { %s1527_s23 = smov 0   ;;  %s1529_s24 = smov 0  }
   0x4 LB: > { %s1544_s25 = sadd.s32 4294967295, %s1472_s24   ;;  %s1224_s26 = sadd.s32 4294967294, %s1472_s24   ;;  %s1472_s24 = sphi %s1529_s24, %s1864_s24   ;;  %s1468_s23 = sphi %s1527_s23, %s1863_s23   ;;  %s1464_s22 = sphi %s1525_s22, %s1862_s22   ;;  %s1460_s21 = sphi %s1523_s21, %s1861_s21  }
   0x5   : > { %s1548_s27 = sadd.s32 1, %s1472_s24   ;;  %s158_s28 = sadd.s32 1, %s1468_s23 }
   0x6   : > { %s155_s29 = ssub.s32 %s1472_s24, %s1548_s27  ;;  %p168_p0 = scmp.ne.s32.totalorder %s1468_s23, %s1464_s22 }
   0x7   : > { %p156_p1 = scmp.eq.s32.totalorder %s155_s29, 0  ;;  %p169_p2 = scmp.eq.s32.totalorder %s1544_s25, 1 }
   0x8   : > { %p174_p3 = scmp.ne.s32.totalorder %s1464_s22, %s1460_s21  ;;  %p175_p4 = scmp.eq.s32.totalorder %s1224_s26, 1 }
   0x9   : > { %s1559_s30 = scalar_select %p156_p1, %s1468_s23, %s158_s28  }
   0xa   : > { %p1561_p5 = por %p169_p2, %p168_p0  ;;  %p1565_p6 = por %p175_p4, %p174_p3 }
   0xb   : > { %p1225_p7 = scmp.ge.s32.totalorder %s1472_s24, 1  ;;  %p182_p8 = scmp.lt.s32.totalorder %s1472_s24, 3 }
   0xc   : > { %p1284_p9 = scmp.eq.s32.totalorder %s1544_s25, 0  ;;  %s196_s11 = sshll.u32 %s1854_s2, 4  ;;  %s197_s11 = int_to_ptr.hbm [resolvable:$true] %s196_s11 }
   0xd   : > { %p183_p10 = pnand %p1225_p7, %p182_p8  ;;  %s1474_s12 = smov [#allocation2]  }
   0xe   : > { %s198_s13 = sshll.u32 %s1474_s12, 4  ;;  %s1475_s14 = smov 64   ;;  %s199_s13 = int_to_ptr.vmem [resolvable:$true] %s198_s13 }
   0xf   : > { %p1276_p11 = pneg %p183_p10  ;;  %s1476_s15 = smov 4  }
  0x10   : > { %230 = sbr.rel (%p183_p10) target bundleno = 1411 (0x583), region = 44 }
  0x11   : > { %p1277_p12 = pnand %p1284_p9, %p1276_p11 }
  0x13   : > { %1279 = dma.hbm_to_vmem [thread:$0]  (!%p1277_p12), %s197_s11, 256, %s199_s13, [#allocation3], %s1475_s14, %s1475_s14, %s1476_s15  }
  0x15   : > { %1451 = dma.done.wait (%p1284_p9), [#allocation3], 256  }
  0x16   : > { %1453 = vsyncadd (%p1284_p9), [#allocation3], 4294967040  ;;  %p260_p13 = scmp.lt.s32.totalorder %s1544_s25, 1  ;;  %v1267_v0 = vld [vmem:[%s1853_s1 + $0x8] sm:$0xff]  ;;  %v1266_v1 = vld [vmem:[%s1853_s1] sm:$0xff]  ;;  %vm283_vm0 = vcmask 261120  }
  0x17   : > { %293 = vmatpush.bf16.msra.mxu0 %v1267_v0  ;;  %s1477_s10 = smov 104   ;;  %s1478_s11 = smov 120   ;;  %v1482_v12 = vmov 1983009808   ;;  %vm311_vm1 = vcmask 1047556   ;;  %vm677_vm2 = vcmask 64512  }
  0x18   : > { %s261_s16 = scalar_select %p260_p13, %s1544_s25, 1  ;;  %v316_v13 = vunpack.c.l.s4 %v1482_v12  ;;  %v1483_v24 = vmov 1934713408   ;;  %vm797_vm3 = vcmask 1043456   ;;  %vm1002_vm4 = vcmask 130048  }
  0x19   : > { %s1479_s12 = smov 112   ;;  %s1480_s13 = smov 96   ;;  %v340_v25 = vunpack.c.l.s4 %v1483_v24  ;;  %vm1004_vm5 = vcmask 195584   ;;  %vm1091_vm6 = vcmask 1041408   ;;  %vm1087_vm8 = vcmask 15360  }
  0x1a   : > { %s1231_s17 = sshll.u32 %s261_s16, 3  ;;  %s1481_s14 = smov 64   ;;  %v1594_v15 = vunpack.c.0.s8 %v316_v13 }
  0x1b   : > { %s263_s20 = scalar_lea.vmem %s1852_s0, %s1231_s17  ;;  %294 = vmatpush.bf16.msra.mxu0 %v1266_v1  ;;  %v1603_v30 = vunpack.c.0.s8 %v340_v25  ;;  %s1484_s15 = smov 16  }
  0x1c   : > { %v265_v2 = vld [vmem:[%s263_s20] sm:$0xff]  ;;  %s1485_s16 = smov 24   ;;  %s1486_s17 = smov 8  }
  0x1d   : > { %v266_v3 = vpack.c.bf16 %v265_v2, %v265_v2 }
  0x1f   : > { %1240 = vmatmul.msk.bf16.vlgmr.msra.gmra.mxu0 %vm283_vm0, %v266_v3 }
  0x9c   : > { %v296_v4 = vpop.f32.mrf.mxu0 }
  0x9d   : > { %307 = vrot.lane.b32.xlu1 %v296_v4, %s1477_s10  ;;  %301 = vrot.lane.b32.xlu0 %v296_v4, %s1478_s11  ;;  %v313_v17 = vrot.slane %v296_v4, 4 }
  0xa4   : > { %v298_v5 = vpop.f32.mrf.mxu0 }
  0xa5   : > { %304 = vrot.lane.b32.xlu0 %v296_v4, %s1479_s12 }
 0x10f   : > { %v302_v6 = vpop.permute.xlu0 %301  ;;  %v308_v8 = vpop.permute.xlu1 %307 }
 0x110   : > { %v1333_v7 = vpack.i.bf16 %v302_v6, %v296_v4  ;;  %v323_v16 = vrot.slane %v308_v8, 4  ;;  %v325_v21 = vrot.slane %v302_v6, 4 }
 0x112   : > { %1334 = vrot.lane.b32.xlu1 %v1333_v7, %s1480_s13  ;;  %v324_v20 = vsel %vm311_vm1, %v323_v16, %v302_v6  ;;  %v326_v27 = vsel %vm311_vm1, %v308_v8, %v325_v21 }
 0x113   : > { %v330_v26 = vperm.slane %v324_v20, %v1594_v15  ;;  %v334_v31 = vperm.slane %v326_v27, %v1594_v15 }
 0x115   : > { %v335_v33 = vrot.slane %v330_v26, 4  ;;  %v347_v38 = vrot.slane %v334_v31, 4 }
 0x117   : > { %v305_v9 = vpop.permute.xlu0 %304 }
 0x118   : > { %v1348_v10 = vpack.i.bf16 %v308_v8, %v305_v9  ;;  %v310_v11 = vrot.slane %v305_v9, 4  ;;  %v314_v19 = vsel %vm311_vm1, %v305_v9, %v313_v17 }
 0x119   : > { %v322_v22 = vperm.slane %v314_v19, %v1594_v15 }
 0x11a   : > { %1349 = vrot.lane.b32.xlu0 %v1348_v10, %s1481_s14  ;;  %1339 = vrot.lane.b32.xlu2 %v1348_v10, %s1480_s13  ;;  %v312_v14 = vsel %vm311_vm1, %v310_v11, %v296_v4  ;;  %s1426_s13 = scalar_lea.hbm %s1858_s6, 16 }
 0x11b   : > { %v318_v18 = vperm.slane %v312_v14, %v1594_v15  ;;  %v349_v29 = vrot.slane %v322_v22, 4  ;;  %v348_v40 = vsel %vm311_vm1, %v347_v38, %v322_v22 }
 0x11c   : > { %v354_v43 = vperm.slane %v348_v40, %v1603_v30 }
 0x11d   : > { %v337_v23 = vrot.slane %v318_v18, 4  ;;  %v350_v34 = vsel %vm311_vm1, %v334_v31, %v349_v29  ;;  %v336_v35 = vsel %vm311_vm1, %v335_v33, %v318_v18 }
 0x11e   : > { %v358_v36 = vperm.slane %v350_v34, %v1603_v30  ;;  %v342_v39 = vperm.slane %v336_v35, %v1603_v30  ;;  %v363_v48 = vrot.slane %v354_v43, 4 }
 0x11f   : > { %v338_v28 = vsel %vm311_vm1, %v330_v26, %v337_v23 }
 0x120   : > { %v346_v32 = vperm.slane %v338_v28, %v1603_v30  ;;  %v365_v42 = vrot.slane %v358_v36, 4  ;;  %v359_v44 = vrot.slane %v342_v39, 4  ;;  %v364_v53 = vsel %vm311_vm1, 0.0, %v363_v48 }
 0x122   : > { %1344 = vrot.lane.b32.xlu2 %v1333_v7, %s1481_s14  ;;  %v361_v37 = vrot.slane %v346_v32, 4  ;;  %v366_v46 = vsel %vm311_vm1, 0.0, %v365_v42  ;;  %v360_v47 = vsel %vm311_vm1, 0.0, %v359_v44  ;;  %v378_v50 = vsel %vm311_vm1, %v365_v42, %v354_v43 }
 0x123   : > { %v383_v51 = vrot.slane %v366_v46, 4  ;;  %v382_v54 = vperm.slane %v378_v50, %v1594_v15 }
 0x124   : > { %v362_v41 = vsel %vm311_vm1, 0.0, %v361_v37  ;;  %v367_v49 = vsel %vm311_vm1, %v361_v37, %v342_v39 }
 0x125   : > { %v372_v45 = vrot.slane %v362_v41, 4  ;;  %v371_v55 = vperm.slane %v367_v49, %v1594_v15  ;;  %v384_v57 = vsel %vm311_vm1, %v383_v51, %v364_v53  ;;  %v403_v60 = vrot.slane %v382_v54, 4 }
 0x126   : > { %v388_v58 = vperm.slane %v384_v57, %v1594_v15 }
 0x127   : > { %v373_v52 = vsel %vm311_vm1, %v372_v45, %v360_v47  ;;  %v391_v59 = vrot.slane %v371_v55, 4 }
 0x128   : > { %v377_v56 = vperm.slane %v373_v52, %v1594_v15  ;;  %v404_v0 = vsel %vm311_vm1, %v388_v58, %v403_v60  ;;  %v401_v2 = vrot.slane %v388_v58, 4 }
 0x129   : > { %v412_v6 = vperm.slane %v404_v0, %v1603_v30 }
 0x12a   : > { %v389_v61 = vrot.slane %v377_v56, 4  ;;  %v392_v63 = vsel %vm311_vm1, %v377_v56, %v391_v59  ;;  %v402_v9 = vsel %vm311_vm1, %v401_v2, %v382_v54 }
 0x12b   : > { %v400_v5 = vperm.slane %v392_v63, %v1603_v30  ;;  %v417_v18 = vrot.slane %v412_v6, 4  ;;  %v1640_v25 = vperm.slane %v402_v9, %v1603_v30 }
 0x12c   : > { %v390_v1 = vsel %vm311_vm1, %v389_v61, %v371_v55 }
 0x12d   : > { %v1631_v7 = vperm.slane %v390_v1, %v1603_v30  ;;  %v419_v16 = vrot.slane %v400_v5, 4  ;;  %v1654_v37 = vsel %vm311_vm1, %v417_v18, %v400_v5 }
 0x12f   : > { %v415_v17 = vrot.slane %v1631_v7, 4  ;;  %v1647_v35 = vsel %vm311_vm1, %v412_v6, %v419_v16 }
 0x131   : > { %v1651_v36 = vsel %vm311_vm1, %v1640_v25, %v415_v17 }
 0x174   : > { %v1340_v62 = vpop.permute.xlu2 %1339 }
 0x175   : > { %v1342_v3 = vunpack.i.h.bf16 %v1340_v62  ;;  %v1341_v4 = vunpack.i.l.bf16 %v1340_v62 }
 0x177   : > { %v449_v10 = vrot.slane %v1342_v3, 4  ;;  %v437_v11 = vrot.slane %v1341_v4, 4 }
 0x17c   : > { %v1345_v14 = vpop.permute.xlu2 %1344 }
 0x17d   : > { %v1347_v26 = vunpack.i.h.bf16 %v1345_v14  ;;  %v1346_v27 = vunpack.i.l.bf16 %v1345_v14 }
 0x17f   : > { %v577_v47 = vrot.slane %v1347_v26, 4  ;;  %v565_v48 = vrot.slane %v1346_v27, 4 }
 0x184   : > { %v1335_v8 = vpop.permute.xlu1 %1334 }
 0x185   : > { %v1337_v12 = vunpack.i.h.bf16 %v1335_v8  ;;  %v1336_v13 = vunpack.i.l.bf16 %v1335_v8 }
 0x187   : > { %v451_v19 = vrot.slane %v1337_v12, 4  ;;  %v438_v20 = vsel %vm311_vm1, %v437_v11, %v1336_v13  ;;  %v439_v21 = vrot.slane %v1336_v13, 4  ;;  %v450_v22 = vsel %vm311_vm1, %v449_v10, %v1337_v12 }
 0x188   : > { %v444_v23 = vperm.slane %v438_v20, %v1594_v15  ;;  %v456_v24 = vperm.slane %v450_v22, %v1594_v15 }
 0x189   : > { %v440_v28 = vsel %vm311_vm1, %v1341_v4, %v439_v21  ;;  %v452_v29 = vsel %vm311_vm1, %v1342_v3, %v451_v19 }
 0x18a   : > { %v448_v31 = vperm.slane %v440_v28, %v1594_v15  ;;  %v460_v32 = vperm.slane %v452_v29, %v1594_v15  ;;  %v461_v33 = vrot.slane %v456_v24, 4  ;;  %v463_v34 = vrot.slane %v444_v23, 4 }
 0x18c   : > { %v462_v38 = vsel %vm311_vm1, %v461_v33, %v444_v23  ;;  %v464_v39 = vsel %vm311_vm1, %v456_v24, %v463_v34  ;;  %v473_v40 = vrot.slane %v460_v32, 4  ;;  %v475_v41 = vrot.slane %v448_v31, 4  ;;  %v1350_v42 = vpop.permute.xlu0 %1349 }
 0x18d   : > { %v468_v43 = vperm.slane %v462_v38, %v1603_v30  ;;  %v472_v44 = vperm.slane %v464_v39, %v1603_v30  ;;  %v1352_v45 = vunpack.i.h.bf16 %v1350_v42  ;;  %v1351_v46 = vunpack.i.l.bf16 %v1350_v42 }
 0x18e   : > { %v474_v49 = vsel %vm311_vm1, %v473_v40, %v448_v31  ;;  %v476_v50 = vsel %vm311_vm1, %v460_v32, %v475_v41 }
 0x18f   : > { %v480_v51 = vperm.slane %v474_v49, %v1603_v30  ;;  %v484_v52 = vperm.slane %v476_v50, %v1603_v30  ;;  %v485_v53 = vrot.slane %v468_v43, 4  ;;  %v487_v54 = vrot.slane %v472_v44, 4 }
 0x190   : > { %v575_v55 = vrot.slane %v1352_v45, 4  ;;  %v563_v56 = vrot.slane %v1351_v46, 4  ;;  %v566_v57 = vsel %vm311_vm1, %v1351_v46, %v565_v48  ;;  %v578_v58 = vsel %vm311_vm1, %v1352_v45, %v577_v47 }
 0x191   : > { %v486_v59 = vsel %vm311_vm1, 0.0, %v485_v53  ;;  %v488_v60 = vsel %vm311_vm1, 0.0, %v487_v54  ;;  %v489_v61 = vrot.slane %v480_v51, 4  ;;  %v491_v62 = vrot.slane %v484_v52, 4 }
 0x192   : > { %v493_v63 = vsel %vm311_vm1, %v487_v54, %v468_v43  ;;  %v498_v0 = vrot.slane %v488_v60, 4  ;;  %v564_v1 = vsel %vm311_vm1, %v563_v56, %v1346_v27  ;;  %v574_v2 = vperm.slane %v566_v57, %v1594_v15 }
 0x193   : > { %v492_v3 = vsel %vm311_vm1, 0.0, %v491_v62  ;;  %v570_v4 = vperm.slane %v564_v1, %v1594_v15  ;;  %v576_v5 = vsel %vm311_vm1, %v575_v55, %v1347_v26  ;;  %v586_v6 = vperm.slane %v578_v58, %v1594_v15 }
 0x194   : > { %v509_v8 = vrot.slane %v492_v3, 4  ;;  %v582_v9 = vperm.slane %v576_v5, %v1594_v15  ;;  %v601_v10 = vrot.slane %v574_v2, 4  ;;  %v490_v11 = vsel %vm311_vm1, 0.0, %v489_v61 }
 0x195   : > { %v589_v12 = vrot.slane %v570_v4, 4  ;;  %v599_v13 = vrot.slane %v586_v6, 4  ;;  %v497_v14 = vperm.slane %v493_v63, %v1594_v15  ;;  %v499_v16 = vsel %vm311_vm1, %v498_v0, %v486_v59 }
 0x196   : > { %v587_v17 = vrot.slane %v582_v9, 4  ;;  %v602_v18 = vsel %vm311_vm1, %v586_v6, %v601_v10  ;;  %v503_v19 = vperm.slane %v499_v16, %v1594_v15  ;;  %v504_v20 = vsel %vm311_vm1, %v491_v62, %v480_v51 }
 0x197   : > { %v590_v21 = vsel %vm311_vm1, %v582_v9, %v589_v12  ;;  %v600_v22 = vsel %vm311_vm1, %v599_v13, %v574_v2  ;;  %v610_v23 = vperm.slane %v602_v18, %v1603_v30  ;;  %v508_v24 = vperm.slane %v504_v20, %v1594_v15 }
 0x198   : > { %v588_v26 = vsel %vm311_vm1, %v587_v17, %v570_v4  ;;  %v598_v27 = vperm.slane %v590_v21, %v1603_v30  ;;  %v606_v28 = vperm.slane %v600_v22, %v1603_v30  ;;  %v510_v29 = vsel %vm311_vm1, %v509_v8, %v490_v11 }
 0x199   : > { %v594_v31 = vperm.slane %v588_v26, %v1603_v30  ;;  %v617_v32 = vrot.slane %v610_v23, 4  ;;  %v514_v33 = vperm.slane %v510_v29, %v1594_v15  ;;  %v517_v34 = vrot.slane %v497_v14, 4 }
 0x19a   : > { %v613_v38 = vrot.slane %v598_v27, 4  ;;  %v615_v39 = vrot.slane %v606_v28, 4  ;;  %v529_v40 = vrot.slane %v508_v24, 4  ;;  %v515_v41 = vrot.slane %v503_v19, 4 }
 0x19b   : > { %v611_v42 = vrot.slane %v594_v31, 4  ;;  %v618_v43 = vsel %vm311_vm1, 0.0, %v617_v32  ;;  %v630_v44 = vsel %vm311_vm1, %v617_v32, %v606_v28  ;;  %v518_v45 = vsel %vm311_vm1, %v503_v19, %v517_v34 }
 0x19c   : > { %v614_v46 = vsel %vm311_vm1, 0.0, %v613_v38  ;;  %v616_v47 = vsel %vm311_vm1, 0.0, %v615_v39  ;;  %v635_v48 = vrot.slane %v618_v43, 4  ;;  %v526_v49 = vperm.slane %v518_v45, %v1603_v30 }
 0x19d   : > { %v624_v50 = vrot.slane %v614_v46, 4  ;;  %v530_v51 = vsel %vm311_vm1, %v514_v33, %v529_v40  ;;  %v516_v52 = vsel %vm311_vm1, %v515_v41, %v497_v14  ;;  %v527_v53 = vrot.slane %v514_v33, 4 }
 0x19e   : > { %v538_v54 = vperm.slane %v530_v51, %v1603_v30  ;;  %v545_v55 = vrot.slane %v526_v49, 4  ;;  %v522_v56 = vperm.slane %v516_v52, %v1603_v30  ;;  %v612_v57 = vsel %vm311_vm1, 0.0, %v611_v42 }
 0x19f   : > { %v528_v58 = vsel %vm311_vm1, %v527_v53, %v508_v24  ;;  %v619_v59 = vsel %vm311_vm1, %v613_v38, %v594_v31  ;;  %v625_v60 = vsel %vm311_vm1, %v624_v50, %v612_v57  ;;  %v634_v61 = vperm.slane %v630_v44, %v1594_v15 }
 0x1a0   : > { %v546_v62 = vsel %vm311_vm1, %v538_v54, %v545_v55  ;;  %v534_v63 = vperm.slane %v528_v58, %v1603_v30  ;;  %v541_v0 = vrot.slane %v522_v56, 4  ;;  %v543_v1 = vrot.slane %v538_v54, 4 }
 0x1a1   : > { %v550_v2 = vpack.c.bf16 %v546_v62, %v546_v62  ;;  %v623_v3 = vperm.slane %v619_v59, %v1594_v15  ;;  %v629_v4 = vperm.slane %v625_v60, %v1594_v15  ;;  %v636_v5 = vsel %vm311_vm1, %v635_v48, %v616_v47 }
 0x1a2   : > { %v542_v6 = vsel %vm311_vm1, %v534_v63, %v541_v0  ;;  %v544_v8 = vsel %vm311_vm1, %v543_v1, %v526_v49  ;;  %v539_v9 = vrot.slane %v534_v63, 4  ;;  %v640_v10 = vperm.slane %v636_v5, %v1594_v15 }
 0x1a3   : > { %v739_v11 = vsel %vm677_vm2, %v550_v2, 0  ;;  %v548_v12 = vpack.c.bf16 %v542_v6, %v542_v6  ;;  %v549_v13 = vpack.c.bf16 %v544_v8, %v544_v8  ;;  %v643_v14 = vrot.slane %v623_v3, 4 }
 0x1a4   : > { %748 = vmatpush.bf16.xpose.msrb.mxu0 %v739_v11  ;;  %v540_v16 = vsel %vm311_vm1, %v539_v9, %v522_v56  ;;  %v655_v17 = vrot.slane %v634_v61, 4  ;;  %v641_v18 = vrot.slane %v629_v4, 4  ;;  %v653_v19 = vrot.slane %v640_v10, 4 }
 0x1a5   : > { %v701_v20 = vsel %vm677_vm2, %v548_v12, 0  ;;  %v720_v21 = vsel %vm677_vm2, %v549_v13, 0  ;;  %v547_v22 = vpack.c.bf16 %v540_v16, %v540_v16  ;;  %v644_v23 = vsel %vm311_vm1, %v629_v4, %v643_v14 }
 0x1a6   : > { %710 = vmatpush.bf16.xpose.msra.mxu2 %v701_v20  ;;  %729 = vmatpush.bf16.xpose.msra.mxu3 %v720_v21  ;;  %v652_v24 = vperm.slane %v644_v23, %v1603_v30  ;;  %v656_v26 = vsel %vm311_vm1, %v640_v10, %v655_v17  ;;  %v642_v27 = vsel %vm311_vm1, %v641_v18, %v623_v3  ;;  %v413_v28 = vrot.slane %v1640_v25, 4 }
 0x1a7   : > { %v682_v29 = vsel %vm677_vm2, %v547_v22, 0  ;;  %v664_v31 = vperm.slane %v656_v26, %v1603_v30  ;;  %v648_v32 = vperm.slane %v642_v27, %v1603_v30  ;;  %v654_v33 = vsel %vm311_vm1, %v653_v19, %v634_v61 }
 0x1a8   : > { %691 = vmatpush.bf16.xpose.msra.mxu1 %v682_v29  ;;  %v671_v34 = vrot.slane %v652_v24, 4  ;;  %v660_v38 = vperm.slane %v654_v33, %v1603_v30  ;;  %v424_v39 = vpack.c.bf16 %v1647_v35, %v1647_v35  ;;  %v423_v41 = vpack.c.bf16 %v1654_v37, %v1654_v37 }
 0x1a9   : > { %v669_v40 = vrot.slane %v664_v31, 4  ;;  %v667_v25 = vrot.slane %v648_v32, 4  ;;  %v422_v42 = vpack.c.bf16 %v1651_v36, %v1651_v36  ;;  %v414_v45 = vsel %vm311_vm1, %v413_v28, %v1631_v7 }
 0x1aa   : > { %v665_v43 = vrot.slane %v660_v38, 4  ;;  %v672_v44 = vsel %vm311_vm1, %v664_v31, %v671_v34  ;;  %v421_v51 = vpack.c.bf16 %v414_v45, %v414_v45 }
 0x1ab   : > { %1244 = vmatmul.msk.bf16.vlgmr.msrb.gmra.mxu0 %vm677_vm2, %v424_v39  ;;  %v670_v46 = vsel %vm311_vm1, %v669_v40, %v652_v24  ;;  %v676_v35 = vpack.c.bf16 %v672_v44, %v672_v44  ;;  %v668_v47 = vsel %vm311_vm1, %v660_v38, %v667_v25 }
 0x1ac   : > { %v675_v48 = vpack.c.bf16 %v670_v46, %v670_v46  ;;  %v666_v37 = vsel %vm311_vm1, %v665_v43, %v648_v32  ;;  %v674_v49 = vpack.c.bf16 %v668_v47, %v668_v47 }
 0x1ad   : > { %1242 = vmatmul.msk.bf16.vlgmr.msra.gmra.mxu2 %vm677_vm2, %v422_v42  ;;  %1243 = vmatmul.msk.bf16.vlgmr.msra.gmra.mxu3 %vm677_vm2, %v423_v41  ;;  %v673_v36 = vpack.c.bf16 %v666_v37, %v666_v37  ;;  %v856_v50 = vsel %vm797_vm3, %v676_v35, 0 }
 0x1ae   : > { %v837_v7 = vsel %vm797_vm3, %v675_v48, 0  ;;  %865 = vmatpush.bf16.msra.mxu0 %v856_v50  ;;  %v818_v52 = vsel %vm797_vm3, %v674_v49, 0 }
 0x1af   : > { %846 = vmatpush.bf16.msrb.mxu3 %v837_v7  ;;  %v799_v53 = vsel %vm797_vm3, %v673_v36, 0  ;;  %1241 = vmatmul.msk.bf16.vlgmr.msra.gmra.mxu1 %vm677_vm2, %v421_v51 }
 0x1b0   : > { %808 = vmatpush.bf16.msrb.mxu1 %v799_v53  ;;  %827 = vmatpush.bf16.msrb.mxu2 %v818_v52 }
 0x228   : > { %v750_v54 = vpop.f32.mrf.mxu0 }
 0x229   : > { %v763_v1 = vsel %vm677_vm2, %v750_v54, -inf }
 0x22c   : > { %v693_v55 = vpop.f32.mrf.mxu1 }
 0x22d   : > { %v754_v56 = vsel %vm677_vm2, %v693_v55, -inf }
 0x22e   : > { %755 = vmax.xlane.f32.xlu0 %v754_v56 }
 0x230   : > { %v712_v57 = vpop.f32.mrf.mxu2  ;;  %v731_v58 = vpop.f32.mrf.mxu3 }
 0x231   : > { %v752_v59 = vpop.f32.mrf.mxu0  ;;  %v760_v60 = vsel %vm677_vm2, %v731_v58, -inf  ;;  %v757_v61 = vsel %vm677_vm2, %v712_v57, -inf }
 0x232   : > { %761 = vmax.xlane.f32.xlu1 %v760_v60  ;;  %758 = vmax.xlane.f32.xlu2 %v757_v61 }
 0x234   : > { %v695_v62 = vpop.f32.mrf.mxu1 }
 0x238   : > { %v714_v63 = vpop.f32.mrf.mxu2  ;;  %v733_v0 = vpop.f32.mrf.mxu3 }
 0x23a   : > { %764 = vmax.xlane.f32.xlu2 %v763_v1 }
 0x2a1   : > { %v756_v2 = vpop.xlane.xlu0 %755 }
 0x2a2   : > { %v766_v3 = vsub.f32 %v693_v55, %v756_v2 }
 0x2a4   : > { %v770_v4 = vmul.f32 1.442695, %v766_v3 }
 0x2a5   : > { %v762_v5 = vpop.xlane.xlu1 %761  ;;  %v759_v6 = vpop.xlane.xlu2 %758 }
 0x2a6   : > { %1354 = vpow2.f32 %v770_v4  ;;  %v768_v8 = vsub.f32 %v731_v58, %v762_v5  ;;  %v767_v9 = vsub.f32 %v712_v57, %v759_v6 }
 0x2a8   : > { %v774_v10 = vmul.f32 1.442695, %v768_v8  ;;  %v772_v11 = vmul.f32 1.442695, %v767_v9 }
 0x2aa   : > { %1356 = vpow2.f32 %v774_v10 }
 0x2ab   : > { %1358 = vpow2.f32 %v772_v11 }
 0x2ac   : > { %v1355_v12 = vpop.eup %1354 }
 0x2ad   : > { %v765_v13 = vpop.xlane.xlu2 %764  ;;  %v778_v14 = vsel %vm677_vm2, %v1355_v12, 0.0  ;;  %v790_v16 = vpack.c.bf16 %v1355_v12, %v1355_v12 }
 0x2ae   : > { %v769_v17 = vsub.f32 %v750_v54, %v765_v13  ;;  %779 = vadd.xlane.f32.xlu2 %v778_v14 }
 0x2af   : > { %1245 = vmatmul.msk.bf16.vlgmr.msrb.gmra.mxu1 %vm677_vm2, %v790_v16 }
 0x2b0   : > { %v1357_v18 = vpop.eup %1356  ;;  %v776_v19 = vmul.f32 1.442695, %v769_v17 }
 0x2b1   : > { %v1359_v20 = vpop.eup %1358  ;;  %v784_v21 = vsel %vm677_vm2, %v1357_v18, 0.0  ;;  %v792_v22 = vpack.c.bf16 %v1357_v18, %v1357_v18 }
 0x2b2   : > { %1360 = vpow2.f32 %v776_v19  ;;  %785 = vadd.xlane.f32.xlu1 %v784_v21  ;;  %v791_v23 = vpack.c.bf16 %v1359_v20, %v1359_v20  ;;  %v781_v27 = vsel %vm677_vm2, %v1359_v20, 0.0 }
 0x2b3   : > { %1247 = vmatmul.msk.bf16.vlgmr.msrb.gmra.mxu3 %vm677_vm2, %v792_v22 }
 0x2b4   : > { %1246 = vmatmul.msk.bf16.vlgmr.msrb.gmra.mxu2 %vm677_vm2, %v791_v23 }
 0x2b8   : > { %v1361_v24 = vpop.eup %1360 }
 0x2b9   : > { %v793_v26 = vpack.c.bf16 %v1361_v24, %v1361_v24  ;;  %v787_v28 = vsel %vm677_vm2, %v1361_v24, 0.0 }
 0x2ba   : > { %782 = vadd.xlane.f32.xlu1 %v781_v27  ;;  %788 = vadd.xlane.f32.xlu0 %v787_v28 }
 0x2bb   : > { %1248 = vmatmul.msk.bf16.vlgmr.msra.gmra.mxu0 %vm677_vm2, %v793_v26 }
 0x321   : > { %v780_v31 = vpop.xlane.xlu2 %779 }
 0x322   : > { %1362 = vrcp.f32 %v780_v31 }
 0x325   : > { %v786_v29 = vpop.xlane.xlu1 %785 }
 0x326   : > { %1364 = vrcp.f32 %v786_v29 }
 0x328   : > { %v1363_v38 = vpop.eup %1362 }
 0x32c   : > { %v810_v32 = vpop.f32.mrf.mxu1  ;;  %v1365_v41 = vpop.eup %1364 }
 0x32d   : > { %v783_v33 = vpop.xlane.xlu1 %782  ;;  %v789_v34 = vpop.xlane.xlu0 %788  ;;  %v875_v39 = vmul.f32 %v1363_v38, %v810_v32 }
 0x32e   : > { %1366 = vrcp.f32 %v783_v33 }
 0x32f   : > { %1368 = vrcp.f32 %v789_v34  ;;  %v881_v43 = vrot.slane %v875_v39, 4 }
 0x334   : > { %v812_v40 = vpop.f32.mrf.mxu1  ;;  %v1367_v42 = vpop.eup %1366 }
 0x335   : > { %v1369_v46 = vpop.eup %1368 }
 0x336   : > { %v848_v25 = vpop.f32.mrf.mxu3 }
 0x337   : > { %v829_v44 = vpop.f32.mrf.mxu2  ;;  %v877_v45 = vmul.f32 %v1365_v41, %v848_v25 }
 0x338   : > { %v876_v35 = vmul.f32 %v1367_v42, %v829_v44  ;;  %v867_v47 = vpop.f32.mrf.mxu0 }
 0x339   : > { %v879_v48 = vrot.slane %v877_v45, 4  ;;  %v882_v37 = vsel %vm311_vm1, %v877_v45, %v881_v43  ;;  %v878_v49 = vmul.f32 %v1369_v46, %v867_v47 }
 0x33a   : > { %v893_v36 = vrot.slane %v876_v35, 4  ;;  %v890_v50 = vperm.slane %v882_v37, %v1594_v15 }
 0x33b   : > { %v880_v51 = vsel %vm311_vm1, %v879_v48, %v875_v39  ;;  %v891_v7 = vrot.slane %v878_v49, 4 }
 0x33c   : > { %v886_v52 = vperm.slane %v880_v51, %v1594_v15  ;;  %v917_v53 = vrot.slane %v890_v50, 4  ;;  %v894_v54 = vsel %vm311_vm1, %v878_v49, %v893_v36  ;;  %v1269_v49 = vld [vmem:[#allocation2 + $0x8] sm:$0xff]  ;;  %v1268_v36 = vld [vmem:[#allocation2] sm:$0xff] }
 0x33d   : > { %v892_v55 = vsel %vm311_vm1, %v891_v7, %v876_v35  ;;  %v902_v56 = vperm.slane %v894_v54, %v1594_v15  ;;  %1036 = vmatpush.bf16.msra.mxu1 %v1269_v49 }
 0x33e   : > { %v905_v57 = vrot.slane %v886_v52, 4  ;;  %v898_v58 = vperm.slane %v892_v55, %v1594_v15  ;;  %v850_v59 = vpop.f32.mrf.mxu3  ;;  %v1061_v55 = vld [vmem:[%s1856_s4 + $0x18] sm:$0xff] }
 0x33f   : > { %v915_v60 = vrot.slane %v902_v56, 4  ;;  %v918_v61 = vsel %vm311_vm1, %v902_v56, %v917_v53  ;;  %v831_v62 = vpop.f32.mrf.mxu2  ;;  %1077 = vmatpush.msra.mxu2 %v1061_v55  ;;  %v1060_v56 = vld [vmem:[%s1856_s4 + $0x10] sm:$0xff]  ;;  %v1086_v59 = vld [vmem:[%s1857_s5] sm:$0x3] }
 0x340   : > { %v903_v63 = vrot.slane %v898_v58, 4  ;;  %v906_v0 = vsel %vm311_vm1, %v898_v58, %v905_v57  ;;  %v926_v1 = vperm.slane %v918_v61, %v1603_v30  ;;  %v869_v2 = vpop.f32.mrf.mxu0  ;;  %v1059_v57 = vld [vmem:[%s1856_s4 + $0x8] sm:$0xff]  ;;  %v1058_v58 = vld [vmem:[%s1856_s4] sm:$0xff]  ;;  %1259 = vmatpush.msk.msra.mxu3 %vm1091_vm6, %v1086_v59 }
 0x341   : > { %v914_v3 = vperm.slane %v906_v0, %v1603_v30  ;;  %v916_v4 = vsel %vm311_vm1, %v915_v60, %v890_v50  ;;  %1037 = vmatpush.bf16.msra.mxu1 %v1268_v36  ;;  %1078 = vmatpush.msra.mxu2 %v1060_v56  ;;  %v1487_v60 = vmov 8.0   ;;  %v1353_v62 = vld [vmem:[%s1855_s3] ss:$0 sm:$0xff] }
 0x342   : > { %v904_v5 = vsel %vm311_vm1, %v903_v63, %v886_v52  ;;  %v922_v6 = vperm.slane %v916_v4, %v1603_v30  ;;  %v933_v8 = vrot.slane %v926_v1, 4  ;;  %1370 = vrcp.f32 %v1487_v60 }
 0x343   : > { %v910_v9 = vperm.slane %v904_v5, %v1603_v30  ;;  %v929_v10 = vrot.slane %v914_v3, 4  ;;  %1079 = vmatpush.msra.mxu2 %v1059_v57 }
 0x344   : > { %v931_v11 = vrot.slane %v922_v6, 4  ;;  %v934_v12 = vsel %vm311_vm1, 0.0, %v933_v8  ;;  %v946_v13 = vsel %vm311_vm1, %v933_v8, %v922_v6 }
 0x345   : > { %v930_v14 = vsel %vm311_vm1, 0.0, %v929_v10  ;;  %v951_v16 = vrot.slane %v934_v12, 4  ;;  %v927_v17 = vrot.slane %v910_v9, 4  ;;  %v935_v18 = vsel %vm311_vm1, %v929_v10, %v910_v9  ;;  %1080 = vmatpush.msra.mxu2 %v1058_v58 }
 0x346   : > { %v940_v19 = vrot.slane %v930_v14, 4  ;;  %v932_v20 = vsel %vm311_vm1, 0.0, %v931_v11  ;;  %v939_v21 = vperm.slane %v935_v18, %v1594_v15  ;;  %v950_v22 = vperm.slane %v946_v13, %v1594_v15 }
 0x347   : > { %v928_v23 = vsel %vm311_vm1, 0.0, %v927_v17  ;;  %v952_v24 = vsel %vm311_vm1, %v951_v16, %v932_v20 }
 0x348   : > { %v941_v26 = vsel %vm311_vm1, %v940_v19, %v928_v23  ;;  %v956_v27 = vperm.slane %v952_v24, %v1594_v15  ;;  %v959_v28 = vrot.slane %v939_v21, 4  ;;  %v971_v29 = vrot.slane %v950_v22, 4  ;;  %v1371_v61 = vpop.eup %1370 }
 0x349   : > { %v945_v31 = vperm.slane %v941_v26, %v1594_v15  ;;  %v1051_v63 = vmul.f32 8.0, %v1371_v61  ;;  %vm1055_vm7 = vweird.f32 %v1371_v61 }
 0x34a   : > { %v972_v32 = vsel %vm311_vm1, %v956_v27, %v971_v29  ;;  %v969_v33 = vrot.slane %v956_v27, 4 }
 0x34b   : > { %v960_v34 = vsel %vm311_vm1, %v945_v31, %v959_v28  ;;  %v980_v38 = vperm.slane %v972_v32, %v1603_v30  ;;  %v957_v39 = vrot.slane %v945_v31, 4  ;;  %v1052_v2 = vsub.f32 1.0, %v1051_v63 }
 0x34c   : > { %v968_v40 = vperm.slane %v960_v34, %v1603_v30  ;;  %v970_v41 = vsel %vm311_vm1, %v969_v33, %v950_v22 }
 0x34d   : > { %v985_v25 = vrot.slane %v980_v38, 4  ;;  %v958_v42 = vsel %vm311_vm1, %v957_v39, %v939_v21  ;;  %v976_v43 = vperm.slane %v970_v41, %v1603_v30  ;;  %v1053_v5 = vmul.f32 %v1371_v61, %v1052_v2 }
 0x34e   : > { %v987_v44 = vrot.slane %v968_v40, 4  ;;  %v964_v15 = vperm.slane %v958_v42, %v1603_v30 }
 0x34f   : > { %v986_v45 = vsel %vm311_vm1, %v985_v25, %v968_v40  ;;  %v981_v46 = vrot.slane %v976_v43, 4  ;;  %v1054_v10 = vadd.f32 %v1371_v61, %v1053_v5 }
 0x350   : > { %994 = vrot.lane.b32.xlu0 %v986_v45, %s1484_s15  ;;  %v988_v35 = vsel %vm311_vm1, %v980_v38, %v987_v44  ;;  %v983_v47 = vrot.slane %v964_v15, 4  ;;  %s257_s15 = sand.u32 1, %s1464_s22  }
 0x351   : > { %998 = vrot.lane.b32.xlu1 %v988_v35, %s1485_s16  ;;  %v982_v48 = vsel %vm311_vm1, %v981_v46, %v964_v15  ;;  %v1056_v13 = vsel %vm1055_vm7, %v1371_v61, %v1054_v10  ;;  %s1230_s16 = sshll.u32 %s257_s15, 3 }
 0x352   : > { %v984_v37 = vsel %vm311_vm1, %v976_v43, %v983_v47  ;;  %s259_s26 = scalar_lea.vmem [#allocation5], %s1230_s16 }
 0x353   : > { %990 = vrot.lane.b32.xlu2 %v984_v37, %s1486_s17  ;;  %s1263_s17 = sshll.u32 %s1544_s25, 3  ;;  %s1150_s28 = sshll.u32 %s259_s26, 4  ;;  %s1151_s28 = int_to_ptr.vmem [resolvable:$true] %s1150_s28 }
 0x354   : > { %s1148_s20 = scalar_lea.hbm %s1858_s6, %s1263_s17  ;;  %s1138_s25 = scalar_lea.sflag [#allocation4], %s257_s15 }
 0x355   : > { %s1152_s29 = sshll.u32 %s1148_s20, 4  ;;  %s1153_s29 = int_to_ptr.hbm [resolvable:$true] %s1152_s29 }
 0x356   : > { %s1420_s9 = sshra.s32 %s1153_s29, 4  ;;  %s1421_s9 = int_to_ptr.hbm [resolvable:$true] %s1420_s9 }
 0x357   : > { %s1422_s10 = scalar_lea.hbm %s1421_s9, 8  ;;  %p1427_p3 = scmp.lt.s32.totalorder %s1421_s9, %s1858_s6 }
 0x358   : > { %p1423_p0 = scmp.ne.s32.totalorder %s1421_s9, %s1422_s10  ;;  %p1428_p4 = scmp.lt.s32.totalorder %s1426_s13, %s1422_s10 }
 0x35a   : > { %p1424_p1 = pnand %p1423_p0, %p1561_p5  ;;  %p1429_p7 = por %p1428_p4, %p1427_p3 }
 0x35c   : > { %p1425_p2 = pneg %p1424_p1 }
 0x35e   : > { %p1430_p8 = pnand %p1429_p7, %p1425_p2 }
 0x3ad   : > { %v991_v30 = vpop.permute.xlu2 %990 }
 0x3ae   : > { %v1001_v50 = vsel %vm677_vm2, %v982_v48, %v991_v30 }
 0x3c2   : > { %v995_v51 = vpop.permute.xlu0 %994 }
 0x3c3   : > { %v1003_v7 = vsel %vm1002_vm4, %v1001_v50, %v995_v51  ;;  %v999_v52 = vpop.permute.xlu1 %998 }
 0x3c4   : > { %v1005_v53 = vsel %vm1004_vm5, %v1003_v7, %v999_v52 }
 0x3c5   : > { %v1006_v54 = vpack.c.bf16 %v1005_v53, %v1005_v53 }
 0x3c7   : > { %1257 = vmatmul.msk.bf16.vlgmr.msra.gmra.mxu1 %vm283_vm0, %v1006_v54 }
 0x444   : > { %v1039_v0 = vpop.f32.mrf.mxu1 }
 0x445   : > { %v1040_v1 = vadd.f32 %v1353_v62, %v1039_v0 }
 0x447   : > { %v1043_v3 = vsel %vm283_vm0, %v1040_v1, 0.0 }
 0x448   : > { %v1044_v4 = vrot.slane %v1043_v3, 4 }
 0x44a   : > { %v1045_v6 = vadd.f32 %v1044_v4, %v1043_v3 }
 0x44c   : > { %v1046_v8 = vrot.slane %v1045_v6, 2  ;;  %v1041_v9 = vpop.f32.mrf.mxu1 }
 0x44e   : > { %v1047_v11 = vadd.f32 %v1046_v8, %v1045_v6 }
 0x450   : > { %v1048_v12 = vrot.slane %v1047_v11, 1 }
 0x452   : > { %v1049_v14 = vadd.f32 %v1048_v12, %v1047_v11 }
 0x454   : > { %v1057_v16 = vmul.f32 %v1056_v13, %v1049_v14 }
 0x456   : > { %1258 = vmatmul.msk.f32.vlgmr.msra.gmra.mxu2 %vm283_vm0, %v1057_v16 }
 0x4d9   : > { %v1082_v17 = vpop.f32.mrf.mxu2 }
 0x4da   : > { %v1085_v18 = vmax.f32 %v1082_v17, 0.0 }
 0x4dc   : > { %1260 = vmatmul.msk.f32.vlgmr.msra.gmra.mxu3 %vm1087_vm8, %v1085_v18 }
 0x55f   : > { %v1112_v19 = vpop.f32.mrf.mxu3 }
 0x560   : > { %v1261_v20 = vmul.f32 -1.442695, %v1112_v19 }
 0x562   : > { %1372 = vpow2.f32 %v1261_v20 }
 0x568   : > { %v1373_v21 = vpop.eup %1372 }
 0x569   : > { %v1118_v22 = vadd.f32 1.0, %v1373_v21 }
 0x56b   : > { %1374 = vrcp.f32 %v1118_v22  ;;  %v1130_v27 = vand.u32 2147483648, %v1118_v22  ;;  %v1128_v29 = vand.u32 2147483647, %v1118_v22  ;;  %vm1124_vm10 = vweird.f32 %v1118_v22 }
 0x56d   : > { %v1131_v32 = vor.u32 1.1754944e-38, %v1130_v27  ;;  %vm1129_vm12 = vcmp.eq.f32.partialorder %v1128_v29, 8.507059e+37 }
 0x571   : > { %v1375_v23 = vpop.eup %1374 }
 0x572   : > { %v1120_v24 = vmul.f32 %v1375_v23, %v1118_v22  ;;  %vm1125_vm9 = vweird.f32 %v1375_v23 }
 0x573   : > { %vm1126_vm11 = vmor %vm1124_vm10, %vm1125_vm9 }
 0x574   : > { %v1121_v26 = vsub.f32 1.0, %v1120_v24 }
 0x576   : > { %v1122_v28 = vmul.f32 %v1375_v23, %v1121_v26 }
 0x578   : > { %v1123_v31 = vadd.f32 %v1375_v23, %v1122_v28 }
 0x57a   : > { %v1127_v33 = vsel %vm1126_vm11, %v1375_v23, %v1123_v31 }
 0x57b   : > { %v1132_v34 = vsel %vm1129_vm12, %v1131_v32, %v1127_v33 }
 0x57c   : > { %v1134_v38 = vperm.slane %v1132_v34, 0 }
 0x57e   : > { %v1135_v39 = vmul.f32 %v1134_v38, %v1040_v1 }
 0x580   : > { %1136 = vst.msk [vmem:[%s259_s26] sm:$0xff] %vm283_vm0, %v1135_v39 }
 0x581   : > { %1433 = shalt.err (!%p1430_p8)
}
 0x582   : > { %1274 = dma.vmem_to_hbm [thread:$0]  (%p1561_p5), %s1151_s28, 128, %s1153_s29, %s1138_s25  }
 0x583 PF: > { %p1286_p9 = scmp.ge.s32.totalorder %s1472_s24, 2  ;;  %s1164_s15 = sand.u32 1, %s1460_s21  }
 0x584   : > { %s1165_s17 = scalar_lea.sflag [#allocation4], %s1164_s15 }
 0x585   : > { %p1281_p10 = pnand %p1286_p9, %p1565_p6 }
 0x587   : > { %p1282_p11 = pneg %p1281_p10 }
 0x589   : > { %1455 = dma.done.wait (%p1282_p11), %s1165_s17, 128  }
 0x58a   : > { %1457 = vsyncadd (%p1282_p11), %s1165_s17, 4294967168  ;;  %p17_p12 = scmp.ge.s32.totalorder %s1548_s27, 4   ;;  %s1861_s21 = smov %s1464_s22 }
 0x58b   : > { %s1862_s22 = smov %s1468_s23  ;;  %s1863_s23 = smov %s1559_s30 }
 0x58c   : > { %s1864_s24 = smov %s1548_s27  ;;  %19 = sbr.rel (!%p17_p12) target bundleno = 4 (0x4), region = 84 }
 0x591   :  { %1171 = vsyncpa [#allocation3], 1 }
 0x592   :  { %1173 = vsyncpa [#allocation3 + $0x1], 1 }
 0x593   :  { %1174 = vsyncpa [#allocation4], 1 }
 0x594   :  { %1176 = vsyncpa [#allocation4 + $0x1], 1 }

</bundles_post_ra>
